<compile_context>
chip_gen: v7x
topology: tpu7x:2x2x1
jax: 0.10.0
libtpu: 0.0.40
codegen_flags: <defaults>
</compile_context>

<pallas_src>
import numpy as np
import jax
import jax.numpy as jnp
from jax.experimental import pallas as pl
from jax.experimental.pallas import tpu as pltpu


def _make_gather_kernel(blk):
    """Kernel gathering `blk` rows of packed_data (HBM) per grid step, double-buffered."""

    def kernel(idx_ref, data_hbm, out_ref, row_buf, sems):
        b = pl.program_id(0)
        nb = pl.num_programs(0)
        slot = b & 1

        def issue(block, slot_):
            # blk independent single-row DMAs, all in flight together.
            base = block * blk
            for r in range(blk):
                row = idx_ref[base + r]
                pltpu.make_async_copy(
                    data_hbm.at[pl.ds(row, 1), :],
                    row_buf.at[slot_, pl.ds(r, 1), :],
                    sems.at[slot_, r],
                ).start()

        # Prime: first block's fetches (only on the very first grid step).
        @pl.when(b == 0)
        def _():
            issue(0, 0)

        # Prefetch next block into the other slot before waiting on this one,
        # so its DMA latency is hidden behind this step's wait + store.
        @pl.when(b + 1 < nb)
        def _():
            issue(b + 1, 1 - slot)

        # Wait for this block's blk row fetches (wait only needs sem + dst shape).
        for r in range(blk):
            pltpu.make_async_copy(
                data_hbm.at[pl.ds(0, 1), :],
                row_buf.at[slot, pl.ds(r, 1), :],
                sems.at[slot, r],
            ).wait()

        # One full (blk, H) tile store — unmasked, (8,128)-aligned when H % 128 == 0.
        out_ref[...] = row_buf[slot]

    return kernel


def extract_last_elements(packed_data, gather_idx, *, blk=None):
    """Gather rows `gather_idx` from packed_data via a Pallas kernel.

    packed_data: [T_total, H] float array (PackedSequence.data)
    gather_idx:  [B] int32 row indices (already permuted into original batch order)
    returns:     [B, H]
    """
    B = int(gather_idx.shape[0])
    T_total, H = packed_data.shape

    if blk is None:
        # At least 8 rows per tile (f32 sublane packing), up to 64 for large batches
        # (64 keeps the unrolled DMA issue/wait code and semaphore count modest).
        blk = int(min(64, 8 * pl.cdiv(B, 8)))
    num_blocks = int(pl.cdiv(B, blk))
    b_pad = num_blocks * blk

    idx = jnp.asarray(gather_idx, jnp.int32)
    if b_pad != B:
        # Padding rows gather row 0 (always valid since T_total >= 1); sliced off below.
        idx = jnp.concatenate([idx, jnp.zeros((b_pad - B,), jnp.int32)])

    out = pl.pallas_call(
        _make_gather_kernel(blk),
        out_shape=jax.ShapeDtypeStruct((b_pad, H), packed_data.dtype),
        grid_spec=pltpu.PrefetchScalarGridSpec(
            num_scalar_prefetch=1,          # gather indices land in SMEM
            grid=(num_blocks,),
            in_specs=[
                # packed_data stays in HBM; rows are fetched manually by DMA.
                pl.BlockSpec(memory_space=pl.ANY),
            ],
            out_specs=pl.BlockSpec((blk, H), lambda i, idx_ref: (i, 0)),
            scratch_shapes=[
                pltpu.VMEM((2, blk, H), packed_data.dtype),   # double-buffered row slab
                pltpu.SemaphoreType.DMA((2, blk)),            # one sem per in-flight row
            ],
        ),
        compiler_params=pltpu.CompilerParams(
            # DMA state is carried across grid steps (double buffering) → must be
            # strictly sequential.
            dimension_semantics=("arbitrary",),
            vmem_limit_bytes=32 * 1024 * 1024,
        ),
    )(idx, packed_data)

    return out[:B]


def last_element_extractor(packed_data, batch_sizes, sorted_indices,
                           unsorted_indices, lengths):
    """JAX/Pallas equivalent of LastElementExtractor.forward.

    Assumes every length >= 1 and all gather indices fit in int32 (same implicit
    assumptions as the torch original).
    """
    lengths = jnp.asarray(lengths, dtype=jnp.int32)
    B = lengths.shape[0]
    # sum_batch_sizes = cat([0, 0], cumsum(batch_sizes));
    # sum_batch_sizes[L] == number of packed rows strictly before timestep L-1.
    sum_batch_sizes = jnp.concatenate(
        [jnp.zeros((2,), jnp.int32),
         jnp.cumsum(jnp.asarray(batch_sizes, jnp.int32))])
    sorted_lengths = lengths[jnp.asarray(sorted_indices, jnp.int32)]
    last_seq_idxs = sum_batch_sizes[sorted_lengths] + jnp.arange(B, dtype=jnp.int32)
    # Fold the final `unsorted_indices` permutation into the gather indices so the
    # kernel emits rows directly in original batch order.
    gather_idx = last_seq_idxs[jnp.asarray(unsorted_indices, jnp.int32)]
    return extract_last_elements(packed_data, gather_idx)


def _make_packed_sequence(padded, lengths):
    """Replicate torch.nn.utils.rnn.pack_padded_sequence(enforce_sorted=False)."""
    lengths = np.asarray(lengths, dtype=np.int32)
    B, max_len, _ = padded.shape
    # torch sorts by length descending (stable)
    sorted_indices = np.argsort(-lengths, kind="stable").astype(np.int32)
    unsorted_indices = np.argsort(sorted_indices).astype(np.int32)
    batch_sizes = np.array([(lengths > t).sum() for t in range(int(lengths.max()))],
                           dtype=np.int32)
    rows = []
    for t in range(int(lengths.max())):
        for j in range(int(batch_sizes[t])):
            rows.append(padded[sorted_indices[j], t])
    packed_data = jnp.stack(rows)  # [T_total, H]
    return packed_data, jnp.asarray(batch_sizes), jnp.asarray(sorted_indices), \
        jnp.asarray(unsorted_indices)


if __name__ == "__main__":
    # Small deterministic example: batch=4, hidden=128, variable sequence lengths.
    lengths = np.array([5, 8, 3, 6], dtype=np.int32)
    B = len(lengths)
    H = 128
    max_len = int(lengths.max())

    key = jax.random.PRNGKey(0)
    padded = jax.random.normal(key, (B, max_len, H), dtype=jnp.float32)

    packed_data, batch_sizes, sorted_indices, unsorted_indices = \
        _make_packed_sequence(np.asarray(padded), lengths)

    out = last_element_extractor(packed_data, batch_sizes, sorted_indices,
                                 unsorted_indices, lengths)
    out = jax.block_until_ready(out)

    # Reference: last valid element of each (unpadded) sequence, original order.
    ref = jnp.stack([padded[i, int(lengths[i]) - 1] for i in range(B)])
    np.testing.assert_allclose(np.asarray(out), np.asarray(ref), rtol=1e-6, atol=1e-6)

    print("KERNEL_OK")
</pallas_src>

<mosaic_0001>
module attributes {stable_mosaic.version = 11 : i64} {
  func.func @kernel(%arg0: i32, %arg1: memref<8xi32, #tpu.memory_space<smem>>, %arg2: memref<22x128xf32, #tpu.memory_space<any>>, %arg3: memref<8x128xf32, #tpu.memory_space<vmem>>, %arg4: memref<2x8x128xf32, #tpu.memory_space<vmem>>, %arg5: memref<2x8x!tpu.dma_semaphore, #tpu.memory_space<semaphore_mem>>) attributes {dimension_semantics = [#tpu.dimension_semantics<arbitrary>], iteration_bounds = array<i64: 1>, scalar_prefetch = 1 : i64, scratch_operands = 2 : i64, tpu.core_type = #tpu.core_type<tc>, window_params = [{}, {transform_indices = @transform_1, window_bounds = array<i64: 8, 128>}]} {
    %c1_i32 = arith.constant 1 : i32
    %0 = arith.andi %arg0, %c1_i32 : i32
    %c0_i32 = arith.constant 0 : i32
    %1 = arith.cmpi eq, %arg0, %c0_i32 : i32
    %2 = arith.extui %1 : i1 to i32
    %c0_i32_0 = arith.constant 0 : i32
    %3 = arith.cmpi ne, %2, %c0_i32_0 : i32
    scf.if %3 {
      %c0_41 = arith.constant 0 : index
      %52 = memref.load %arg1[%c0_41] : memref<8xi32, #tpu.memory_space<smem>>
      %c0_i32_42 = arith.constant 0 : i32
      %c0_i32_43 = arith.constant 0 : i32
      %c0_i32_44 = arith.constant 0 : i32
      %c0_i32_45 = arith.constant 0 : i32
      %53 = tpu.memref_slice %arg2[%52, %c0_i32_45] : memref<22x128xf32, #tpu.memory_space<any>> -> memref<1x128xf32, #tpu.memory_space<any>>
      %c0_i32_46 = arith.constant 0 : i32
      %c0_i32_47 = arith.constant 0 : i32
      %54 = tpu.memref_slice %arg4[%c0_i32_42, %c0_i32_46, %c0_i32_47] : memref<2x8x128xf32, #tpu.memory_space<vmem>> -> memref<1x1x128xf32, #tpu.memory_space<vmem>>
      %55 = tpu.memref_squeeze %54 : memref<1x1x128xf32, #tpu.memory_space<vmem>> -> memref<1x128xf32, #tpu.memory_space<vmem>>
      %56 = tpu.memref_slice %arg5[%c0_i32_43, %c0_i32_44] : memref<2x8x!tpu.dma_semaphore, #tpu.memory_space<semaphore_mem>> -> memref<1x1x!tpu.dma_semaphore, #tpu.memory_space<semaphore_mem>>
      %57 = tpu.memref_squeeze %56 : memref<1x1x!tpu.dma_semaphore, #tpu.memory_space<semaphore_mem>> -> memref<!tpu.dma_semaphore, #tpu.memory_space<semaphore_mem>>
      tpu.enqueue_dma source(%53 : memref<1x128xf32, #tpu.memory_space<any>>) target(%55 : memref<1x128xf32, #tpu.memory_space<vmem>>) target_semaphore(%57 : memref<!tpu.dma_semaphore, #tpu.memory_space<semaphore_mem>>)
      %c1 = arith.constant 1 : index
      %58 = memref.load %arg1[%c1] : memref<8xi32, #tpu.memory_space<smem>>
      %c0_i32_48 = arith.constant 0 : i32
      %c0_i32_49 = arith.constant 0 : i32
      %c1_i32_50 = arith.constant 1 : i32
      %c0_i32_51 = arith.constant 0 : i32
      %59 = tpu.memref_slice %arg2[%58, %c0_i32_51] : memref<22x128xf32, #tpu.memory_space<any>> -> memref<1x128xf32, #tpu.memory_space<any>>
      %c1_i32_52 = arith.constant 1 : i32
      %c0_i32_53 = arith.constant 0 : i32
      %60 = tpu.memref_slice %arg4[%c0_i32_48, %c1_i32_52, %c0_i32_53] : memref<2x8x128xf32, #tpu.memory_space<vmem>> -> memref<1x1x128xf32, #tpu.memory_space<vmem>>
      %61 = tpu.memref_squeeze %60 : memref<1x1x128xf32, #tpu.memory_space<vmem>> -> memref<1x128xf32, #tpu.memory_space<vmem>>
      %62 = tpu.memref_slice %arg5[%c0_i32_49, %c1_i32_50] : memref<2x8x!tpu.dma_semaphore, #tpu.memory_space<semaphore_mem>> -> memref<1x1x!tpu.dma_semaphore, #tpu.memory_space<semaphore_mem>>
      %63 = tpu.memref_squeeze %62 : memref<1x1x!tpu.dma_semaphore, #tpu.memory_space<semaphore_mem>> -> memref<!tpu.dma_semaphore, #tpu.memory_space<semaphore_mem>>
      tpu.enqueue_dma source(%59 : memref<1x128xf32, #tpu.memory_space<any>>) target(%61 : memref<1x128xf32, #tpu.memory_space<vmem>>) target_semaphore(%63 : memref<!tpu.dma_semaphore, #tpu.memory_space<semaphore_mem>>)
      %c2 = arith.constant 2 : index
      %64 = memref.load %arg1[%c2] : memref<8xi32, #tpu.memory_space<smem>>
      %c0_i32_54 = arith.constant 0 : i32
      %c0_i32_55 = arith.constant 0 : i32
      %c2_i32_56 = arith.constant 2 : i32
      %c0_i32_57 = arith.constant 0 : i32
      %65 = tpu.memref_slice %arg2[%64, %c0_i32_57] : memref<22x128xf32, #tpu.memory_space<any>> -> memref<1x128xf32, #tpu.memory_space<any>>
      %c2_i32_58 = arith.constant 2 : i32
      %c0_i32_59 = arith.constant 0 : i32
      %66 = tpu.memref_slice %arg4[%c0_i32_54, %c2_i32_58, %c0_i32_59] : memref<2x8x128xf32, #tpu.memory_space<vmem>> -> memref<1x1x128xf32, #tpu.memory_space<vmem>>
      %67 = tpu.memref_squeeze %66 : memref<1x1x128xf32, #tpu.memory_space<vmem>> -> memref<1x128xf32, #tpu.memory_space<vmem>>
      %68 = tpu.memref_slice %arg5[%c0_i32_55, %c2_i32_56] : memref<2x8x!tpu.dma_semaphore, #tpu.memory_space<semaphore_mem>> -> memref<1x1x!tpu.dma_semaphore, #tpu.memory_space<semaphore_mem>>
      %69 = tpu.memref_squeeze %68 : memref<1x1x!tpu.dma_semaphore, #tpu.memory_space<semaphore_mem>> -> memref<!tpu.dma_semaphore, #tpu.memory_space<semaphore_mem>>
      tpu.enqueue_dma source(%65 : memref<1x128xf32, #tpu.memory_space<any>>) target(%67 : memref<1x128xf32, #tpu.memory_space<vmem>>) target_semaphore(%69 : memref<!tpu.dma_semaphore, #tpu.memory_space<semaphore_mem>>)
      %c3 = arith.constant 3 : index
      %70 = memref.load %arg1[%c3] : memref<8xi32, #tpu.memory_space<smem>>
      %c0_i32_60 = arith.constant 0 : i32
      %c0_i32_61 = arith.constant 0 : i32
      %c3_i32_62 = arith.constant 3 : i32
      %c0_i32_63 = arith.constant 0 : i32
      %71 = tpu.memref_slice %arg2[%70, %c0_i32_63] : memref<22x128xf32, #tpu.memory_space<any>> -> memref<1x128xf32, #tpu.memory_space<any>>
      %c3_i32_64 = arith.constant 3 : i32
      %c0_i32_65 = arith.constant 0 : i32
      %72 = tpu.memref_slice %arg4[%c0_i32_60, %c3_i32_64, %c0_i32_65] : memref<2x8x128xf32, #tpu.memory_space<vmem>> -> memref<1x1x128xf32, #tpu.memory_space<vmem>>
      %73 = tpu.memref_squeeze %72 : memref<1x1x128xf32, #tpu.memory_space<vmem>> -> memref<1x128xf32, #tpu.memory_space<vmem>>
      %74 = tpu.memref_slice %arg5[%c0_i32_61, %c3_i32_62] : memref<2x8x!tpu.dma_semaphore, #tpu.memory_space<semaphore_mem>> -> memref<1x1x!tpu.dma_semaphore, #tpu.memory_space<semaphore_mem>>
      %75 = tpu.memref_squeeze %74 : memref<1x1x!tpu.dma_semaphore, #tpu.memory_space<semaphore_mem>> -> memref<!tpu.dma_semaphore, #tpu.memory_space<semaphore_mem>>
      tpu.enqueue_dma source(%71 : memref<1x128xf32, #tpu.memory_space<any>>) target(%73 : memref<1x128xf32, #tpu.memory_space<vmem>>) target_semaphore(%75 : memref<!tpu.dma_semaphore, #tpu.memory_space<semaphore_mem>>)
      %c4 = arith.constant 4 : index
      %76 = memref.load %arg1[%c4] : memref<8xi32, #tpu.memory_space<smem>>
      %c0_i32_66 = arith.constant 0 : i32
      %c0_i32_67 = arith.constant 0 : i32
      %c4_i32_68 = arith.constant 4 : i32
      %c0_i32_69 = arith.constant 0 : i32
      %77 = tpu.memref_slice %arg2[%76, %c0_i32_69] : memref<22x128xf32, #tpu.memory_space<any>> -> memref<1x128xf32, #tpu.memory_space<any>>
      %c4_i32_70 = arith.constant 4 : i32
      %c0_i32_71 = arith.constant 0 : i32
      %78 = tpu.memref_slice %arg4[%c0_i32_66, %c4_i32_70, %c0_i32_71] : memref<2x8x128xf32, #tpu.memory_space<vmem>> -> memref<1x1x128xf32, #tpu.memory_space<vmem>>
      %79 = tpu.memref_squeeze %78 : memref<1x1x128xf32, #tpu.memory_space<vmem>> -> memref<1x128xf32, #tpu.memory_space<vmem>>
      %80 = tpu.memref_slice %arg5[%c0_i32_67, %c4_i32_68] : memref<2x8x!tpu.dma_semaphore, #tpu.memory_space<semaphore_mem>> -> memref<1x1x!tpu.dma_semaphore, #tpu.memory_space<semaphore_mem>>
      %81 = tpu.memref_squeeze %80 : memref<1x1x!tpu.dma_semaphore, #tpu.memory_space<semaphore_mem>> -> memref<!tpu.dma_semaphore, #tpu.memory_space<semaphore_mem>>
      tpu.enqueue_dma source(%77 : memref<1x128xf32, #tpu.memory_space<any>>) target(%79 : memref<1x128xf32, #tpu.memory_space<vmem>>) target_semaphore(%81 : memref<!tpu.dma_semaphore, #tpu.memory_space<semaphore_mem>>)
      %c5 = arith.constant 5 : index
      %82 = memref.load %arg1[%c5] : memref<8xi32, #tpu.memory_space<smem>>
      %c0_i32_72 = arith.constant 0 : i32
      %c0_i32_73 = arith.constant 0 : i32
      %c5_i32_74 = arith.constant 5 : i32
      %c0_i32_75 = arith.constant 0 : i32
      %83 = tpu.memref_slice %arg2[%82, %c0_i32_75] : memref<22x128xf32, #tpu.memory_space<any>> -> memref<1x128xf32, #tpu.memory_space<any>>
      %c5_i32_76 = arith.constant 5 : i32
      %c0_i32_77 = arith.constant 0 : i32
      %84 = tpu.memref_slice %arg4[%c0_i32_72, %c5_i32_76, %c0_i32_77] : memref<2x8x128xf32, #tpu.memory_space<vmem>> -> memref<1x1x128xf32, #tpu.memory_space<vmem>>
      %85 = tpu.memref_squeeze %84 : memref<1x1x128xf32, #tpu.memory_space<vmem>> -> memref<1x128xf32, #tpu.memory_space<vmem>>
      %86 = tpu.memref_slice %arg5[%c0_i32_73, %c5_i32_74] : memref<2x8x!tpu.dma_semaphore, #tpu.memory_space<semaphore_mem>> -> memref<1x1x!tpu.dma_semaphore, #tpu.memory_space<semaphore_mem>>
      %87 = tpu.memref_squeeze %86 : memref<1x1x!tpu.dma_semaphore, #tpu.memory_space<semaphore_mem>> -> memref<!tpu.dma_semaphore, #tpu.memory_space<semaphore_mem>>
      tpu.enqueue_dma source(%83 : memref<1x128xf32, #tpu.memory_space<any>>) target(%85 : memref<1x128xf32, #tpu.memory_space<vmem>>) target_semaphore(%87 : memref<!tpu.dma_semaphore, #tpu.memory_space<semaphore_mem>>)
      %c6 = arith.constant 6 : index
      %88 = memref.load %arg1[%c6] : memref<8xi32, #tpu.memory_space<smem>>
      %c0_i32_78 = arith.constant 0 : i32
      %c0_i32_79 = arith.constant 0 : i32
      %c6_i32_80 = arith.constant 6 : i32
      %c0_i32_81 = arith.constant 0 : i32
      %89 = tpu.memref_slice %arg2[%88, %c0_i32_81] : memref<22x128xf32, #tpu.memory_space<any>> -> memref<1x128xf32, #tpu.memory_space<any>>
      %c6_i32_82 = arith.constant 6 : i32
      %c0_i32_83 = arith.constant 0 : i32
      %90 = tpu.memref_slice %arg4[%c0_i32_78, %c6_i32_82, %c0_i32_83] : memref<2x8x128xf32, #tpu.memory_space<vmem>> -> memref<1x1x128xf32, #tpu.memory_space<vmem>>
      %91 = tpu.memref_squeeze %90 : memref<1x1x128xf32, #tpu.memory_space<vmem>> -> memref<1x128xf32, #tpu.memory_space<vmem>>
      %92 = tpu.memref_slice %arg5[%c0_i32_79, %c6_i32_80] : memref<2x8x!tpu.dma_semaphore, #tpu.memory_space<semaphore_mem>> -> memref<1x1x!tpu.dma_semaphore, #tpu.memory_space<semaphore_mem>>
      %93 = tpu.memref_squeeze %92 : memref<1x1x!tpu.dma_semaphore, #tpu.memory_space<semaphore_mem>> -> memref<!tpu.dma_semaphore, #tpu.memory_space<semaphore_mem>>
      tpu.enqueue_dma source(%89 : memref<1x128xf32, #tpu.memory_space<any>>) target(%91 : memref<1x128xf32, #tpu.memory_space<vmem>>) target_semaphore(%93 : memref<!tpu.dma_semaphore, #tpu.memory_space<semaphore_mem>>)
      %c7 = arith.constant 7 : index
      %94 = memref.load %arg1[%c7] : memref<8xi32, #tpu.memory_space<smem>>
      %c0_i32_84 = arith.constant 0 : i32
      %c0_i32_85 = arith.constant 0 : i32
      %c7_i32_86 = arith.constant 7 : i32
      %c0_i32_87 = arith.constant 0 : i32
      %95 = tpu.memref_slice %arg2[%94, %c0_i32_87] : memref<22x128xf32, #tpu.memory_space<any>> -> memref<1x128xf32, #tpu.memory_space<any>>
      %c7_i32_88 = arith.constant 7 : i32
      %c0_i32_89 = arith.constant 0 : i32
      %96 = tpu.memref_slice %arg4[%c0_i32_84, %c7_i32_88, %c0_i32_89] : memref<2x8x128xf32, #tpu.memory_space<vmem>> -> memref<1x1x128xf32, #tpu.memory_space<vmem>>
      %97 = tpu.memref_squeeze %96 : memref<1x1x128xf32, #tpu.memory_space<vmem>> -> memref<1x128xf32, #tpu.memory_space<vmem>>
      %98 = tpu.memref_slice %arg5[%c0_i32_85, %c7_i32_86] : memref<2x8x!tpu.dma_semaphore, #tpu.memory_space<semaphore_mem>> -> memref<1x1x!tpu.dma_semaphore, #tpu.memory_space<semaphore_mem>>
      %99 = tpu.memref_squeeze %98 : memref<1x1x!tpu.dma_semaphore, #tpu.memory_space<semaphore_mem>> -> memref<!tpu.dma_semaphore, #tpu.memory_space<semaphore_mem>>
      tpu.enqueue_dma source(%95 : memref<1x128xf32, #tpu.memory_space<any>>) target(%97 : memref<1x128xf32, #tpu.memory_space<vmem>>) target_semaphore(%99 : memref<!tpu.dma_semaphore, #tpu.memory_space<semaphore_mem>>)
    } else {
    }
    %c1_i32_1 = arith.constant 1 : i32
    %4 = arith.addi %arg0, %c1_i32_1 : i32
    %c1_i32_2 = arith.constant 1 : i32
    %5 = arith.cmpi slt, %4, %c1_i32_2 : i32
    %6 = arith.extui %5 : i1 to i32
    %c0_i32_3 = arith.constant 0 : i32
    %7 = arith.cmpi ne, %6, %c0_i32_3 : i32
    scf.if %7 {
      %c1_i32_41 = arith.constant 1 : i32
      %52 = arith.addi %arg0, %c1_i32_41 : i32
      %c1_i32_42 = arith.constant 1 : i32
      %53 = arith.subi %c1_i32_42, %0 : i32
      %c8_i32 = arith.constant 8 : i32
      %54 = arith.muli %52, %c8_i32 : i32
      %c0_i32_43 = arith.constant 0 : i32
      %55 = arith.addi %54, %c0_i32_43 : i32
      %56 = arith.index_cast %55 : i32 to index
      %57 = memref.load %arg1[%56] : memref<8xi32, #tpu.memory_space<smem>>
      %c0_i32_44 = arith.constant 0 : i32
      %c0_i32_45 = arith.constant 0 : i32
      %58 = tpu.memref_slice %arg2[%57, %c0_i32_45] : memref<22x128xf32, #tpu.memory_space<any>> -> memref<1x128xf32, #tpu.memory_space<any>>
      %c0_i32_46 = arith.constant 0 : i32
      %c0_i32_47 = arith.constant 0 : i32
      %59 = tpu.memref_slice %arg4[%53, %c0_i32_46, %c0_i32_47] : memref<2x8x128xf32, #tpu.memory_space<vmem>> -> memref<1x1x128xf32, #tpu.memory_space<vmem>>
      %60 = tpu.memref_squeeze %59 : memref<1x1x128xf32, #tpu.memory_space<vmem>> -> memref<1x128xf32, #tpu.memory_space<vmem>>
      %61 = tpu.memref_slice %arg5[%53, %c0_i32_44] : memref<2x8x!tpu.dma_semaphore, #tpu.memory_space<semaphore_mem>> -> memref<1x1x!tpu.dma_semaphore, #tpu.memory_space<semaphore_mem>>
      %62 = tpu.memref_squeeze %61 : memref<1x1x!tpu.dma_semaphore, #tpu.memory_space<semaphore_mem>> -> memref<!tpu.dma_semaphore, #tpu.memory_space<semaphore_mem>>
      tpu.enqueue_dma source(%58 : memref<1x128xf32, #tpu.memory_space<any>>) target(%60 : memref<1x128xf32, #tpu.memory_space<vmem>>) target_semaphore(%62 : memref<!tpu.dma_semaphore, #tpu.memory_space<semaphore_mem>>)
      %c1_i32_48 = arith.constant 1 : i32
      %63 = arith.addi %54, %c1_i32_48 : i32
      %64 = arith.index_cast %63 : i32 to index
      %65 = memref.load %arg1[%64] : memref<8xi32, #tpu.memory_space<smem>>
      %c1_i32_49 = arith.constant 1 : i32
      %c0_i32_50 = arith.constant 0 : i32
      %66 = tpu.memref_slice %arg2[%65, %c0_i32_50] : memref<22x128xf32, #tpu.memory_space<any>> -> memref<1x128xf32, #tpu.memory_space<any>>
      %c1_i32_51 = arith.constant 1 : i32
      %c0_i32_52 = arith.constant 0 : i32
      %67 = tpu.memref_slice %arg4[%53, %c1_i32_51, %c0_i32_52] : memref<2x8x128xf32, #tpu.memory_space<vmem>> -> memref<1x1x128xf32, #tpu.memory_space<vmem>>
      %68 = tpu.memref_squeeze %67 : memref<1x1x128xf32, #tpu.memory_space<vmem>> -> memref<1x128xf32, #tpu.memory_space<vmem>>
      %69 = tpu.memref_slice %arg5[%53, %c1_i32_49] : memref<2x8x!tpu.dma_semaphore, #tpu.memory_space<semaphore_mem>> -> memref<1x1x!tpu.dma_semaphore, #tpu.memory_space<semaphore_mem>>
      %70 = tpu.memref_squeeze %69 : memref<1x1x!tpu.dma_semaphore, #tpu.memory_space<semaphore_mem>> -> memref<!tpu.dma_semaphore, #tpu.memory_space<semaphore_mem>>
      tpu.enqueue_dma source(%66 : memref<1x128xf32, #tpu.memory_space<any>>) target(%68 : memref<1x128xf32, #tpu.memory_space<vmem>>) target_semaphore(%70 : memref<!tpu.dma_semaphore, #tpu.memory_space<semaphore_mem>>)
      %c2_i32_53 = arith.constant 2 : i32
      %71 = arith.addi %54, %c2_i32_53 : i32
      %72 = arith.index_cast %71 : i32 to index
      %73 = memref.load %arg1[%72] : memref<8xi32, #tpu.memory_space<smem>>
      %c2_i32_54 = arith.constant 2 : i32
      %c0_i32_55 = arith.constant 0 : i32
      %74 = tpu.memref_slice %arg2[%73, %c0_i32_55] : memref<22x128xf32, #tpu.memory_space<any>> -> memref<1x128xf32, #tpu.memory_space<any>>
      %c2_i32_56 = arith.constant 2 : i32
      %c0_i32_57 = arith.constant 0 : i32
      %75 = tpu.memref_slice %arg4[%53, %c2_i32_56, %c0_i32_57] : memref<2x8x128xf32, #tpu.memory_space<vmem>> -> memref<1x1x128xf32, #tpu.memory_space<vmem>>
      %76 = tpu.memref_squeeze %75 : memref<1x1x128xf32, #tpu.memory_space<vmem>> -> memref<1x128xf32, #tpu.memory_space<vmem>>
      %77 = tpu.memref_slice %arg5[%53, %c2_i32_54] : memref<2x8x!tpu.dma_semaphore, #tpu.memory_space<semaphore_mem>> -> memref<1x1x!tpu.dma_semaphore, #tpu.memory_space<semaphore_mem>>
      %78 = tpu.memref_squeeze %77 : memref<1x1x!tpu.dma_semaphore, #tpu.memory_space<semaphore_mem>> -> memref<!tpu.dma_semaphore, #tpu.memory_space<semaphore_mem>>
      tpu.enqueue_dma source(%74 : memref<1x128xf32, #tpu.memory_space<any>>) target(%76 : memref<1x128xf32, #tpu.memory_space<vmem>>) target_semaphore(%78 : memref<!tpu.dma_semaphore, #tpu.memory_space<semaphore_mem>>)
      %c3_i32_58 = arith.constant 3 : i32
      %79 = arith.addi %54, %c3_i32_58 : i32
      %80 = arith.index_cast %79 : i32 to index
      %81 = memref.load %arg1[%80] : memref<8xi32, #tpu.memory_space<smem>>
      %c3_i32_59 = arith.constant 3 : i32
      %c0_i32_60 = arith.constant 0 : i32
      %82 = tpu.memref_slice %arg2[%81, %c0_i32_60] : memref<22x128xf32, #tpu.memory_space<any>> -> memref<1x128xf32, #tpu.memory_space<any>>
      %c3_i32_61 = arith.constant 3 : i32
      %c0_i32_62 = arith.constant 0 : i32
      %83 = tpu.memref_slice %arg4[%53, %c3_i32_61, %c0_i32_62] : memref<2x8x128xf32, #tpu.memory_space<vmem>> -> memref<1x1x128xf32, #tpu.memory_space<vmem>>
      %84 = tpu.memref_squeeze %83 : memref<1x1x128xf32, #tpu.memory_space<vmem>> -> memref<1x128xf32, #tpu.memory_space<vmem>>
      %85 = tpu.memref_slice %arg5[%53, %c3_i32_59] : memref<2x8x!tpu.dma_semaphore, #tpu.memory_space<semaphore_mem>> -> memref<1x1x!tpu.dma_semaphore, #tpu.memory_space<semaphore_mem>>
      %86 = tpu.memref_squeeze %85 : memref<1x1x!tpu.dma_semaphore, #tpu.memory_space<semaphore_mem>> -> memref<!tpu.dma_semaphore, #tpu.memory_space<semaphore_mem>>
      tpu.enqueue_dma source(%82 : memref<1x128xf32, #tpu.memory_space<any>>) target(%84 : memref<1x128xf32, #tpu.memory_space<vmem>>) target_semaphore(%86 : memref<!tpu.dma_semaphore, #tpu.memory_space<semaphore_mem>>)
      %c4_i32_63 = arith.constant 4 : i32
      %87 = arith.addi %54, %c4_i32_63 : i32
      %88 = arith.index_cast %87 : i32 to index
      %89 = memref.load %arg1[%88] : memref<8xi32, #tpu.memory_space<smem>>
      %c4_i32_64 = arith.constant 4 : i32
      %c0_i32_65 = arith.constant 0 : i32
      %90 = tpu.memref_slice %arg2[%89, %c0_i32_65] : memref<22x128xf32, #tpu.memory_space<any>> -> memref<1x128xf32, #tpu.memory_space<any>>
      %c4_i32_66 = arith.constant 4 : i32
      %c0_i32_67 = arith.constant 0 : i32
      %91 = tpu.memref_slice %arg4[%53, %c4_i32_66, %c0_i32_67] : memref<2x8x128xf32, #tpu.memory_space<vmem>> -> memref<1x1x128xf32, #tpu.memory_space<vmem>>
      %92 = tpu.memref_squeeze %91 : memref<1x1x128xf32, #tpu.memory_space<vmem>> -> memref<1x128xf32, #tpu.memory_space<vmem>>
      %93 = tpu.memref_slice %arg5[%53, %c4_i32_64] : memref<2x8x!tpu.dma_semaphore, #tpu.memory_space<semaphore_mem>> -> memref<1x1x!tpu.dma_semaphore, #tpu.memory_space<semaphore_mem>>
      %94 = tpu.memref_squeeze %93 : memref<1x1x!tpu.dma_semaphore, #tpu.memory_space<semaphore_mem>> -> memref<!tpu.dma_semaphore, #tpu.memory_space<semaphore_mem>>
      tpu.enqueue_dma source(%90 : memref<1x128xf32, #tpu.memory_space<any>>) target(%92 : memref<1x128xf32, #tpu.memory_space<vmem>>) target_semaphore(%94 : memref<!tpu.dma_semaphore, #tpu.memory_space<semaphore_mem>>)
      %c5_i32_68 = arith.constant 5 : i32
      %95 = arith.addi %54, %c5_i32_68 : i32
      %96 = arith.index_cast %95 : i32 to index
      %97 = memref.load %arg1[%96] : memref<8xi32, #tpu.memory_space<smem>>
      %c5_i32_69 = arith.constant 5 : i32
      %c0_i32_70 = arith.constant 0 : i32
      %98 = tpu.memref_slice %arg2[%97, %c0_i32_70] : memref<22x128xf32, #tpu.memory_space<any>> -> memref<1x128xf32, #tpu.memory_space<any>>
      %c5_i32_71 = arith.constant 5 : i32
      %c0_i32_72 = arith.constant 0 : i32
      %99 = tpu.memref_slice %arg4[%53, %c5_i32_71, %c0_i32_72] : memref<2x8x128xf32, #tpu.memory_space<vmem>> -> memref<1x1x128xf32, #tpu.memory_space<vmem>>
      %100 = tpu.memref_squeeze %99 : memref<1x1x128xf32, #tpu.memory_space<vmem>> -> memref<1x128xf32, #tpu.memory_space<vmem>>
      %101 = tpu.memref_slice %arg5[%53, %c5_i32_69] : memref<2x8x!tpu.dma_semaphore, #tpu.memory_space<semaphore_mem>> -> memref<1x1x!tpu.dma_semaphore, #tpu.memory_space<semaphore_mem>>
      %102 = tpu.memref_squeeze %101 : memref<1x1x!tpu.dma_semaphore, #tpu.memory_space<semaphore_mem>> -> memref<!tpu.dma_semaphore, #tpu.memory_space<semaphore_mem>>
      tpu.enqueue_dma source(%98 : memref<1x128xf32, #tpu.memory_space<any>>) target(%100 : memref<1x128xf32, #tpu.memory_space<vmem>>) target_semaphore(%102 : memref<!tpu.dma_semaphore, #tpu.memory_space<semaphore_mem>>)
      %c6_i32_73 = arith.constant 6 : i32
      %103 = arith.addi %54, %c6_i32_73 : i32
      %104 = arith.index_cast %103 : i32 to index
      %105 = memref.load %arg1[%104] : memref<8xi32, #tpu.memory_space<smem>>
      %c6_i32_74 = arith.constant 6 : i32
      %c0_i32_75 = arith.constant 0 : i32
      %106 = tpu.memref_slice %arg2[%105, %c0_i32_75] : memref<22x128xf32, #tpu.memory_space<any>> -> memref<1x128xf32, #tpu.memory_space<any>>
      %c6_i32_76 = arith.constant 6 : i32
      %c0_i32_77 = arith.constant 0 : i32
      %107 = tpu.memref_slice %arg4[%53, %c6_i32_76, %c0_i32_77] : memref<2x8x128xf32, #tpu.memory_space<vmem>> -> memref<1x1x128xf32, #tpu.memory_space<vmem>>
      %108 = tpu.memref_squeeze %107 : memref<1x1x128xf32, #tpu.memory_space<vmem>> -> memref<1x128xf32, #tpu.memory_space<vmem>>
      %109 = tpu.memref_slice %arg5[%53, %c6_i32_74] : memref<2x8x!tpu.dma_semaphore, #tpu.memory_space<semaphore_mem>> -> memref<1x1x!tpu.dma_semaphore, #tpu.memory_space<semaphore_mem>>
      %110 = tpu.memref_squeeze %109 : memref<1x1x!tpu.dma_semaphore, #tpu.memory_space<semaphore_mem>> -> memref<!tpu.dma_semaphore, #tpu.memory_space<semaphore_mem>>
      tpu.enqueue_dma source(%106 : memref<1x128xf32, #tpu.memory_space<any>>) target(%108 : memref<1x128xf32, #tpu.memory_space<vmem>>) target_semaphore(%110 : memref<!tpu.dma_semaphore, #tpu.memory_space<semaphore_mem>>)
      %c7_i32_78 = arith.constant 7 : i32
      %111 = arith.addi %54, %c7_i32_78 : i32
      %112 = arith.index_cast %111 : i32 to index
      %113 = memref.load %arg1[%112] : memref<8xi32, #tpu.memory_space<smem>>
      %c7_i32_79 = arith.constant 7 : i32
      %c0_i32_80 = arith.constant 0 : i32
      %114 = tpu.memref_slice %arg2[%113, %c0_i32_80] : memref<22x128xf32, #tpu.memory_space<any>> -> memref<1x128xf32, #tpu.memory_space<any>>
      %c7_i32_81 = arith.constant 7 : i32
      %c0_i32_82 = arith.constant 0 : i32
      %115 = tpu.memref_slice %arg4[%53, %c7_i32_81, %c0_i32_82] : memref<2x8x128xf32, #tpu.memory_space<vmem>> -> memref<1x1x128xf32, #tpu.memory_space<vmem>>
      %116 = tpu.memref_squeeze %115 : memref<1x1x128xf32, #tpu.memory_space<vmem>> -> memref<1x128xf32, #tpu.memory_space<vmem>>
      %117 = tpu.memref_slice %arg5[%53, %c7_i32_79] : memref<2x8x!tpu.dma_semaphore, #tpu.memory_space<semaphore_mem>> -> memref<1x1x!tpu.dma_semaphore, #tpu.memory_space<semaphore_mem>>
      %118 = tpu.memref_squeeze %117 : memref<1x1x!tpu.dma_semaphore, #tpu.memory_space<semaphore_mem>> -> memref<!tpu.dma_semaphore, #tpu.memory_space<semaphore_mem>>
      tpu.enqueue_dma source(%114 : memref<1x128xf32, #tpu.memory_space<any>>) target(%116 : memref<1x128xf32, #tpu.memory_space<vmem>>) target_semaphore(%118 : memref<!tpu.dma_semaphore, #tpu.memory_space<semaphore_mem>>)
    } else {
    }
    %c0_i32_4 = arith.constant 0 : i32
    %c0_i32_5 = arith.constant 0 : i32
    %c0_i32_6 = arith.constant 0 : i32
    %8 = tpu.memref_slice %arg2[%c0_i32_5, %c0_i32_6] : memref<22x128xf32, #tpu.memory_space<any>> -> memref<1x128xf32, #tpu.memory_space<any>>
    %c0_i32_7 = arith.constant 0 : i32
    %c0_i32_8 = arith.constant 0 : i32
    %9 = tpu.memref_slice %arg4[%0, %c0_i32_7, %c0_i32_8] : memref<2x8x128xf32, #tpu.memory_space<vmem>> -> memref<1x1x128xf32, #tpu.memory_space<vmem>>
    %10 = tpu.memref_squeeze %9 : memref<1x1x128xf32, #tpu.memory_space<vmem>> -> memref<1x128xf32, #tpu.memory_space<vmem>>
    %11 = tpu.memref_slice %arg5[%0, %c0_i32_4] : memref<2x8x!tpu.dma_semaphore, #tpu.memory_space<semaphore_mem>> -> memref<1x1x!tpu.dma_semaphore, #tpu.memory_space<semaphore_mem>>
    %12 = tpu.memref_squeeze %11 : memref<1x1x!tpu.dma_semaphore, #tpu.memory_space<semaphore_mem>> -> memref<!tpu.dma_semaphore, #tpu.memory_space<semaphore_mem>>
    tpu.wait_dma2 semaphore(%12 : memref<!tpu.dma_semaphore, #tpu.memory_space<semaphore_mem>>) src(%8 : memref<1x128xf32, #tpu.memory_space<any>>) dst(%10 : memref<1x128xf32, #tpu.memory_space<vmem>>)
    %c1_i32_9 = arith.constant 1 : i32
    %c0_i32_10 = arith.constant 0 : i32
    %c0_i32_11 = arith.constant 0 : i32
    %13 = tpu.memref_slice %arg2[%c0_i32_10, %c0_i32_11] : memref<22x128xf32, #tpu.memory_space<any>> -> memref<1x128xf32, #tpu.memory_space<any>>
    %c1_i32_12 = arith.constant 1 : i32
    %c0_i32_13 = arith.constant 0 : i32
    %14 = tpu.memref_slice %arg4[%0, %c1_i32_12, %c0_i32_13] : memref<2x8x128xf32, #tpu.memory_space<vmem>> -> memref<1x1x128xf32, #tpu.memory_space<vmem>>
    %15 = tpu.memref_squeeze %14 : memref<1x1x128xf32, #tpu.memory_space<vmem>> -> memref<1x128xf32, #tpu.memory_space<vmem>>
    %16 = tpu.memref_slice %arg5[%0, %c1_i32_9] : memref<2x8x!tpu.dma_semaphore, #tpu.memory_space<semaphore_mem>> -> memref<1x1x!tpu.dma_semaphore, #tpu.memory_space<semaphore_mem>>
    %17 = tpu.memref_squeeze %16 : memref<1x1x!tpu.dma_semaphore, #tpu.memory_space<semaphore_mem>> -> memref<!tpu.dma_semaphore, #tpu.memory_space<semaphore_mem>>
    tpu.wait_dma2 semaphore(%17 : memref<!tpu.dma_semaphore, #tpu.memory_space<semaphore_mem>>) src(%13 : memref<1x128xf32, #tpu.memory_space<any>>) dst(%15 : memref<1x128xf32, #tpu.memory_space<vmem>>)
    %c2_i32 = arith.constant 2 : i32
    %c0_i32_14 = arith.constant 0 : i32
    %c0_i32_15 = arith.constant 0 : i32
    %18 = tpu.memref_slice %arg2[%c0_i32_14, %c0_i32_15] : memref<22x128xf32, #tpu.memory_space<any>> -> memref<1x128xf32, #tpu.memory_space<any>>
    %c2_i32_16 = arith.constant 2 : i32
    %c0_i32_17 = arith.constant 0 : i32
    %19 = tpu.memref_slice %arg4[%0, %c2_i32_16, %c0_i32_17] : memref<2x8x128xf32, #tpu.memory_space<vmem>> -> memref<1x1x128xf32, #tpu.memory_space<vmem>>
    %20 = tpu.memref_squeeze %19 : memref<1x1x128xf32, #tpu.memory_space<vmem>> -> memref<1x128xf32, #tpu.memory_space<vmem>>
    %21 = tpu.memref_slice %arg5[%0, %c2_i32] : memref<2x8x!tpu.dma_semaphore, #tpu.memory_space<semaphore_mem>> -> memref<1x1x!tpu.dma_semaphore, #tpu.memory_space<semaphore_mem>>
    %22 = tpu.memref_squeeze %21 : memref<1x1x!tpu.dma_semaphore, #tpu.memory_space<semaphore_mem>> -> memref<!tpu.dma_semaphore, #tpu.memory_space<semaphore_mem>>
    tpu.wait_dma2 semaphore(%22 : memref<!tpu.dma_semaphore, #tpu.memory_space<semaphore_mem>>) src(%18 : memref<1x128xf32, #tpu.memory_space<any>>) dst(%20 : memref<1x128xf32, #tpu.memory_space<vmem>>)
    %c3_i32 = arith.constant 3 : i32
    %c0_i32_18 = arith.constant 0 : i32
    %c0_i32_19 = arith.constant 0 : i32
    %23 = tpu.memref_slice %arg2[%c0_i32_18, %c0_i32_19] : memref<22x128xf32, #tpu.memory_space<any>> -> memref<1x128xf32, #tpu.memory_space<any>>
    %c3_i32_20 = arith.constant 3 : i32
    %c0_i32_21 = arith.constant 0 : i32
    %24 = tpu.memref_slice %arg4[%0, %c3_i32_20, %c0_i32_21] : memref<2x8x128xf32, #tpu.memory_space<vmem>> -> memref<1x1x128xf32, #tpu.memory_space<vmem>>
    %25 = tpu.memref_squeeze %24 : memref<1x1x128xf32, #tpu.memory_space<vmem>> -> memref<1x128xf32, #tpu.memory_space<vmem>>
    %26 = tpu.memref_slice %arg5[%0, %c3_i32] : memref<2x8x!tpu.dma_semaphore, #tpu.memory_space<semaphore_mem>> -> memref<1x1x!tpu.dma_semaphore, #tpu.memory_space<semaphore_mem>>
    %27 = tpu.memref_squeeze %26 : memref<1x1x!tpu.dma_semaphore, #tpu.memory_space<semaphore_mem>> -> memref<!tpu.dma_semaphore, #tpu.memory_space<semaphore_mem>>
    tpu.wait_dma2 semaphore(%27 : memref<!tpu.dma_semaphore, #tpu.memory_space<semaphore_mem>>) src(%23 : memref<1x128xf32, #tpu.memory_space<any>>) dst(%25 : memref<1x128xf32, #tpu.memory_space<vmem>>)
    %c4_i32 = arith.constant 4 : i32
    %c0_i32_22 = arith.constant 0 : i32
    %c0_i32_23 = arith.constant 0 : i32
    %28 = tpu.memref_slice %arg2[%c0_i32_22, %c0_i32_23] : memref<22x128xf32, #tpu.memory_space<any>> -> memref<1x128xf32, #tpu.memory_space<any>>
    %c4_i32_24 = arith.constant 4 : i32
    %c0_i32_25 = arith.constant 0 : i32
    %29 = tpu.memref_slice %arg4[%0, %c4_i32_24, %c0_i32_25] : memref<2x8x128xf32, #tpu.memory_space<vmem>> -> memref<1x1x128xf32, #tpu.memory_space<vmem>>
    %30 = tpu.memref_squeeze %29 : memref<1x1x128xf32, #tpu.memory_space<vmem>> -> memref<1x128xf32, #tpu.memory_space<vmem>>
    %31 = tpu.memref_slice %arg5[%0, %c4_i32] : memref<2x8x!tpu.dma_semaphore, #tpu.memory_space<semaphore_mem>> -> memref<1x1x!tpu.dma_semaphore, #tpu.memory_space<semaphore_mem>>
    %32 = tpu.memref_squeeze %31 : memref<1x1x!tpu.dma_semaphore, #tpu.memory_space<semaphore_mem>> -> memref<!tpu.dma_semaphore, #tpu.memory_space<semaphore_mem>>
    tpu.wait_dma2 semaphore(%32 : memref<!tpu.dma_semaphore, #tpu.memory_space<semaphore_mem>>) src(%28 : memref<1x128xf32, #tpu.memory_space<any>>) dst(%30 : memref<1x128xf32, #tpu.memory_space<vmem>>)
    %c5_i32 = arith.constant 5 : i32
    %c0_i32_26 = arith.constant 0 : i32
    %c0_i32_27 = arith.constant 0 : i32
    %33 = tpu.memref_slice %arg2[%c0_i32_26, %c0_i32_27] : memref<22x128xf32, #tpu.memory_space<any>> -> memref<1x128xf32, #tpu.memory_space<any>>
    %c5_i32_28 = arith.constant 5 : i32
    %c0_i32_29 = arith.constant 0 : i32
    %34 = tpu.memref_slice %arg4[%0, %c5_i32_28, %c0_i32_29] : memref<2x8x128xf32, #tpu.memory_space<vmem>> -> memref<1x1x128xf32, #tpu.memory_space<vmem>>
    %35 = tpu.memref_squeeze %34 : memref<1x1x128xf32, #tpu.memory_space<vmem>> -> memref<1x128xf32, #tpu.memory_space<vmem>>
    %36 = tpu.memref_slice %arg5[%0, %c5_i32] : memref<2x8x!tpu.dma_semaphore, #tpu.memory_space<semaphore_mem>> -> memref<1x1x!tpu.dma_semaphore, #tpu.memory_space<semaphore_mem>>
    %37 = tpu.memref_squeeze %36 : memref<1x1x!tpu.dma_semaphore, #tpu.memory_space<semaphore_mem>> -> memref<!tpu.dma_semaphore, #tpu.memory_space<semaphore_mem>>
    tpu.wait_dma2 semaphore(%37 : memref<!tpu.dma_semaphore, #tpu.memory_space<semaphore_mem>>) src(%33 : memref<1x128xf32, #tpu.memory_space<any>>) dst(%35 : memref<1x128xf32, #tpu.memory_space<vmem>>)
    %c6_i32 = arith.constant 6 : i32
    %c0_i32_30 = arith.constant 0 : i32
    %c0_i32_31 = arith.constant 0 : i32
    %38 = tpu.memref_slice %arg2[%c0_i32_30, %c0_i32_31] : memref<22x128xf32, #tpu.memory_space<any>> -> memref<1x128xf32, #tpu.memory_space<any>>
    %c6_i32_32 = arith.constant 6 : i32
    %c0_i32_33 = arith.constant 0 : i32
    %39 = tpu.memref_slice %arg4[%0, %c6_i32_32, %c0_i32_33] : memref<2x8x128xf32, #tpu.memory_space<vmem>> -> memref<1x1x128xf32, #tpu.memory_space<vmem>>
    %40 = tpu.memref_squeeze %39 : memref<1x1x128xf32, #tpu.memory_space<vmem>> -> memref<1x128xf32, #tpu.memory_space<vmem>>
    %41 = tpu.memref_slice %arg5[%0, %c6_i32] : memref<2x8x!tpu.dma_semaphore, #tpu.memory_space<semaphore_mem>> -> memref<1x1x!tpu.dma_semaphore, #tpu.memory_space<semaphore_mem>>
    %42 = tpu.memref_squeeze %41 : memref<1x1x!tpu.dma_semaphore, #tpu.memory_space<semaphore_mem>> -> memref<!tpu.dma_semaphore, #tpu.memory_space<semaphore_mem>>
    tpu.wait_dma2 semaphore(%42 : memref<!tpu.dma_semaphore, #tpu.memory_space<semaphore_mem>>) src(%38 : memref<1x128xf32, #tpu.memory_space<any>>) dst(%40 : memref<1x128xf32, #tpu.memory_space<vmem>>)
    %c7_i32 = arith.constant 7 : i32
    %c0_i32_34 = arith.constant 0 : i32
    %c0_i32_35 = arith.constant 0 : i32
    %43 = tpu.memref_slice %arg2[%c0_i32_34, %c0_i32_35] : memref<22x128xf32, #tpu.memory_space<any>> -> memref<1x128xf32, #tpu.memory_space<any>>
    %c7_i32_36 = arith.constant 7 : i32
    %c0_i32_37 = arith.constant 0 : i32
    %44 = tpu.memref_slice %arg4[%0, %c7_i32_36, %c0_i32_37] : memref<2x8x128xf32, #tpu.memory_space<vmem>> -> memref<1x1x128xf32, #tpu.memory_space<vmem>>
    %45 = tpu.memref_squeeze %44 : memref<1x1x128xf32, #tpu.memory_space<vmem>> -> memref<1x128xf32, #tpu.memory_space<vmem>>
    %46 = tpu.memref_slice %arg5[%0, %c7_i32] : memref<2x8x!tpu.dma_semaphore, #tpu.memory_space<semaphore_mem>> -> memref<1x1x!tpu.dma_semaphore, #tpu.memory_space<semaphore_mem>>
    %47 = tpu.memref_squeeze %46 : memref<1x1x!tpu.dma_semaphore, #tpu.memory_space<semaphore_mem>> -> memref<!tpu.dma_semaphore, #tpu.memory_space<semaphore_mem>>
    tpu.wait_dma2 semaphore(%47 : memref<!tpu.dma_semaphore, #tpu.memory_space<semaphore_mem>>) src(%43 : memref<1x128xf32, #tpu.memory_space<any>>) dst(%45 : memref<1x128xf32, #tpu.memory_space<vmem>>)
    %48 = arith.index_cast %0 : i32 to index
    %c0 = arith.constant 0 : index
    %c0_38 = arith.constant 0 : index
    %49 = vector.load %arg4[%48, %c0, %c0_38] : memref<2x8x128xf32, #tpu.memory_space<vmem>>, vector<1x8x128xf32>
    %50 = vector.shape_cast %49 : vector<1x8x128xf32> to vector<8x128xf32>
    %c0_39 = arith.constant 0 : index
    %c0_40 = arith.constant 0 : index
    %51 = vector.load %arg3[%c0_39, %c0_40] : memref<8x128xf32, #tpu.memory_space<vmem>>, vector<8x128xf32>
    tpu.vector_store %arg3[%c0_39, %c0_40], %50 {strides = array<i32>} : memref<8x128xf32, #tpu.memory_space<vmem>>, vector<8x128xf32>,
    return
  }
  func.func @transform_1(%arg0: i32, %arg1: memref<8xi32, #tpu.memory_space<smem>>) -> (i32, i32) {
    %c0_i32 = arith.constant 0 : i32
    %c0_i32_0 = arith.constant 0 : i32
    return %arg0, %c0_i32 : i32, i32
  }
}

</mosaic_0001>

<bundles_post_ra>
// kernel: tpu_custom_call.1
= control target key start
LH: loop header
LB: loop body
LE: loop exit
PB: predicated region body
PF: predicated region fallthrough
CT: control target
= control target key end

     0   :  { %s1035_s0 = inlined_call_operand.hbm [shape: s32[8], index: 0, kind: input, shape index: {}]   ;;  %s1036_s1 = inlined_call_operand.hbm [shape: f32[22,128], index: 1, kind: input, shape index: {}]   ;;  %s1037_s2 = inlined_call_operand.hbm [shape: f32[8,128], index: 2, kind: output, shape index: {}]  }
   0x1   :  { %s614_s11 = scalar_lea.hbm %s1035_s0, 16 }
   0x2   :  { %p615_p0 = scmp.ne.s32.totalorder %s1035_s0, %s614_s11  ;;  %p618_p1 = scmp.lt.u32.totalorder %s614_s11, %s1035_s0 }
   0x4   :  { %p620_p2 = pnand %p618_p1, %p615_p0 }
   0x6   :  { %623 = shalt.err (!%p620_p2)  }
   0x7   :  { %s858_s16 = smov [#allocation5]  }
   0x8   :  { %8 = dma.hbm_to_smem %s1035_s0, 16, %s858_s16, [#allocation4] }
   0x9   :  { %838 = dma.done.wait [#allocation4], 16 }
   0xa   :  { %839 = vsyncadd [#allocation4], 4294967280 }
   0xb   :  { %10 = sfence }
   0xc   :  { %11 = vsyncpa [#allocation7], 0  ;;  %s17_s19 = sld [smem:[#allocation5]]  ;;  %s859_s20 = smov [#allocation2]  }
   0xd   :  { %s27_s21 = sshll.u32 %s859_s20, 4  ;;  %s895_s22 = sld [smem:[#allocation5 + $0x1]]  ;;  %s897_s21 = int_to_ptr.vmem [resolvable:$true] %s27_s21 }
   0xe   :  { %s860_s23 = smov [#allocation2 + $0x1]   ;;  %s899_s25 = sld [smem:[#allocation5 + $0x2]] }
   0xf   :  { %s43_s24 = sshll.u32 %s860_s23, 4  ;;  %s861_s26 = smov [#allocation2 + $0x2]   ;;  %s901_s24 = int_to_ptr.vmem [resolvable:$true] %s43_s24 }
  0x10   :  { %s59_s0 = sshll.u32 %s861_s26, 4  ;;  %s903_s27 = sld [smem:[#allocation5 + $0x3]]  ;;  %s905_s0 = int_to_ptr.vmem [resolvable:$true] %s59_s0 }
  0x11   :  { %s914_s8 = scalar_lea.hbm %s1036_s1, 384 }
  0x12   :  { %s557_s28 = sshll.u32 %s17_s19, 4 }
  0x13   :  { %s19_s3 = scalar_lea.hbm %s1036_s1, %s557_s28  ;;  %s559_s4 = sshll.u32 %s895_s22, 4 }
  0x14   :  { %s624_s5 = scalar_lea.hbm %s19_s3, 16  ;;  %p627_p4 = scmp.lt.u32.totalorder %s19_s3, %s1036_s1 }
  0x15   :  { %p625_p3 = scmp.ne.s32.totalorder %s19_s3, %s624_s5  ;;  %p628_p5 = scmp.lt.u32.totalorder %s914_s8, %s624_s5 }
  0x16   :  { %p630_p7 = scmp.lt.u32.totalorder %s624_s5, %s19_s3 }
  0x17   :  { %p629_p6 = por %p628_p5, %p627_p4 }
  0x19   :  { %p631_p8 = por %p630_p7, %p629_p6 }
  0x1b   :  { %p632_p9 = pnand %p631_p8, %p625_p3 }
  0x1d   :  { %635 = shalt.err (!%p632_p9)  }
  0x1e   :  { %s636_s11 = scalar_lea.vmem %s897_s21, 16  ;;  %s923_s12 = scalar_lea.vmem %s897_s21, 256 }
  0x1f   :  { %p637_p10 = scmp.ne.s32.totalorder %s897_s21, %s636_s11  ;;  %p641_p11 = scmp.lt.s32.totalorder %s897_s21, %s897_s21 }
  0x20   :  { %p642_p12 = scmp.lt.s32.totalorder %s923_s12, %s636_s11 }
  0x22   :  { %p643_p13 = por %p642_p12, %p641_p11 }
  0x24   :  { %p644_p0 = pnand %p643_p13, %p637_p10 }
  0x26   :  { %647 = shalt.err (!%p644_p0)  }
  0x27   :  { %30 = dma.hbm_to_vmem [thread:$0]  %s19_s3, 16, %s897_s21, [#allocation3] }
  0x28   :  { %s33_s15 = scalar_lea.hbm %s1036_s1, %s559_s4  ;;  %s561_s16 = sshll.u32 %s899_s25, 4 }
  0x29   :  { %s648_s17 = scalar_lea.hbm %s33_s15, 16  ;;  %p651_p2 = scmp.lt.u32.totalorder %s33_s15, %s1036_s1 }
  0x2a   :  { %p649_p1 = scmp.ne.s32.totalorder %s33_s15, %s648_s17  ;;  %p652_p3 = scmp.lt.u32.totalorder %s914_s8, %s648_s17 }
  0x2b   :  { %p654_p5 = scmp.lt.u32.totalorder %s648_s17, %s33_s15 }
  0x2c   :  { %p653_p4 = por %p652_p3, %p651_p2 }
  0x2e   :  { %p655_p6 = por %p654_p5, %p653_p4 }
  0x30   :  { %p656_p7 = pnand %p655_p6, %p649_p1 }
  0x32   :  { %659 = shalt.err (!%p656_p7)  }
  0x33   :  { %s660_s20 = scalar_lea.vmem %s901_s24, 16  ;;  %p665_p9 = scmp.lt.s32.totalorder %s901_s24, %s897_s21 }
  0x34   :  { %p661_p8 = scmp.ne.s32.totalorder %s901_s24, %s660_s20  ;;  %p666_p10 = scmp.lt.s32.totalorder %s923_s12, %s660_s20 }
  0x36   :  { %p667_p11 = por %p666_p10, %p665_p9 }
  0x38   :  { %p668_p12 = pnand %p667_p11, %p661_p8 }
  0x3a   :  { %671 = shalt.err (!%p668_p12)  }
  0x3b   :  { %46 = dma.hbm_to_vmem [thread:$0]  %s33_s15, 16, %s901_s24, [#allocation3 + $0x1] }
  0x3c   :  { %s49_s25 = scalar_lea.hbm %s1036_s1, %s561_s16  ;;  %s563_s26 = sshll.u32 %s903_s27, 4 }
  0x3d   :  { %s672_s28 = scalar_lea.hbm %s49_s25, 16  ;;  %p675_p0 = scmp.lt.u32.totalorder %s49_s25, %s1036_s1 }
  0x3e   :  { %p673_p13 = scmp.ne.s32.totalorder %s49_s25, %s672_s28  ;;  %p676_p1 = scmp.lt.u32.totalorder %s914_s8, %s672_s28 }
  0x3f   :  { %p678_p3 = scmp.lt.u32.totalorder %s672_s28, %s49_s25 }
  0x40   :  { %p677_p2 = por %p676_p1, %p675_p0 }
  0x42   :  { %p679_p4 = por %p678_p3, %p677_p2 }
  0x44   :  { %p680_p5 = pnand %p679_p4, %p673_p13 }
  0x46   :  { %683 = shalt.err (!%p680_p5)  }
  0x47   :  { %s684_s24 = scalar_lea.vmem %s905_s0, 16  ;;  %p689_p7 = scmp.lt.s32.totalorder %s905_s0, %s897_s21 }
  0x48   :  { %p685_p6 = scmp.ne.s32.totalorder %s905_s0, %s684_s24  ;;  %p690_p8 = scmp.lt.s32.totalorder %s923_s12, %s684_s24 }
  0x4a   :  { %p691_p9 = por %p690_p8, %p689_p7 }
  0x4c   :  { %p692_p10 = pnand %p691_p9, %p685_p6 }
  0x4e   :  { %695 = shalt.err (!%p692_p10)  }
  0x4f   :  { %62 = dma.hbm_to_vmem [thread:$0]  %s49_s25, 16, %s905_s0, [#allocation3 + $0x2] }
  0x50   :  { %s65_s4 = scalar_lea.hbm %s1036_s1, %s563_s26  ;;  %s862_s5 = smov [#allocation2 + $0x3]  }
  0x51   :  { %s75_s6 = sshll.u32 %s862_s5, 4  ;;  %s960_s7 = sld [smem:[#allocation5 + $0x4]]  ;;  %s76_s6 = int_to_ptr.vmem [resolvable:$true] %s75_s6 }
  0x52   :  { %s696_s9 = scalar_lea.hbm %s65_s4, 16  ;;  %p699_p12 = scmp.lt.u32.totalorder %s65_s4, %s1036_s1 }
  0x53   :  { %p697_p11 = scmp.ne.s32.totalorder %s65_s4, %s696_s9  ;;  %p700_p13 = scmp.lt.u32.totalorder %s914_s8, %s696_s9 }
  0x54   :  { %p702_p1 = scmp.lt.u32.totalorder %s696_s9, %s65_s4 }
  0x55   :  { %p701_p0 = por %p700_p13, %p699_p12 }
  0x57   :  { %p703_p2 = por %p702_p1, %p701_p0 }
  0x59   :  { %p704_p3 = pnand %p703_p2, %p697_p11 }
  0x5b   :  { %707 = shalt.err (!%p704_p3)  }
  0x5c   :  { %s708_s0 = scalar_lea.vmem %s76_s6, 16  ;;  %p713_p5 = scmp.lt.s32.totalorder %s76_s6, %s897_s21 }
  0x5d   :  { %p709_p4 = scmp.ne.s32.totalorder %s76_s6, %s708_s0  ;;  %p714_p6 = scmp.lt.s32.totalorder %s923_s12, %s708_s0 }
  0x5f   :  { %p715_p7 = por %p714_p6, %p713_p5 }
  0x61   :  { %p716_p8 = pnand %p715_p7, %p709_p4 }
  0x63   :  { %719 = shalt.err (!%p716_p8)  }
  0x64   :  { %78 = dma.hbm_to_vmem [thread:$0]  %s65_s4, 16, %s76_s6, [#allocation3 + $0x3] }
  0x65   :  { %s863_s13 = smov [#allocation2 + $0x4]   ;;  %s968_s15 = sld [smem:[#allocation5 + $0x5]] }
  0x66   :  { %s91_s14 = sshll.u32 %s863_s13, 4  ;;  %s864_s16 = smov [#allocation2 + $0x5]   ;;  %s92_s14 = int_to_ptr.vmem [resolvable:$true] %s91_s14 }
  0x67   :  { %s107_s17 = sshll.u32 %s864_s16, 4  ;;  %s970_s18 = sld [smem:[#allocation5 + $0x6]]  ;;  %s973_s17 = int_to_ptr.vmem [resolvable:$true] %s107_s17 }
  0x68   :  { %s565_s19 = sshll.u32 %s960_s7, 4 }
  0x69   :  { %s81_s23 = scalar_lea.hbm %s1036_s1, %s565_s19 }
  0x6a   :  { %s720_s25 = scalar_lea.hbm %s81_s23, 16  ;;  %p723_p10 = scmp.lt.u32.totalorder %s81_s23, %s1036_s1 }
  0x6b   :  { %p721_p9 = scmp.ne.s32.totalorder %s81_s23, %s720_s25  ;;  %p724_p11 = scmp.lt.u32.totalorder %s914_s8, %s720_s25 }
  0x6c   :  { %p726_p13 = scmp.lt.u32.totalorder %s720_s25, %s81_s23 }
  0x6d   :  { %p725_p12 = por %p724_p11, %p723_p10 }
  0x6f   :  { %p727_p0 = por %p726_p13, %p725_p12 }
  0x71   :  { %p728_p1 = pnand %p727_p0, %p721_p9 }
  0x73   :  { %731 = shalt.err (!%p728_p1)  }
  0x74   :  { %s732_s29 = scalar_lea.vmem %s92_s14, 16  ;;  %p737_p3 = scmp.lt.s32.totalorder %s92_s14, %s897_s21 }
  0x75   :  { %p733_p2 = scmp.ne.s32.totalorder %s92_s14, %s732_s29  ;;  %p738_p4 = scmp.lt.s32.totalorder %s923_s12, %s732_s29 }
  0x77   :  { %p739_p5 = por %p738_p4, %p737_p3 }
  0x79   :  { %p740_p6 = pnand %p739_p5, %p733_p2 }
  0x7b   :  { %743 = shalt.err (!%p740_p6)  }
  0x7c   :  { %94 = dma.hbm_to_vmem [thread:$0]  %s81_s23, 16, %s92_s14, [#allocation3 + $0x4] }
  0x7d   :  { %s567_s30 = sshll.u32 %s968_s15, 4  ;;  %s865_s24 = smov [#allocation2 + $0x6]  }
  0x7e   :  { %s123_s27 = sshll.u32 %s865_s24, 4  ;;  %s97_s5 = scalar_lea.hbm %s1036_s1, %s567_s30  ;;  %s988_s27 = int_to_ptr.vmem [resolvable:$true] %s123_s27 }
  0x7f   :  { %s744_s6 = scalar_lea.hbm %s97_s5, 16  ;;  %p747_p8 = scmp.lt.u32.totalorder %s97_s5, %s1036_s1 }
  0x80   :  { %p745_p7 = scmp.ne.s32.totalorder %s97_s5, %s744_s6  ;;  %p748_p9 = scmp.lt.u32.totalorder %s914_s8, %s744_s6 }
  0x81   :  { %p750_p11 = scmp.lt.u32.totalorder %s744_s6, %s97_s5 }
  0x82   :  { %p749_p10 = por %p748_p9, %p747_p8 }
  0x84   :  { %p751_p12 = por %p750_p11, %p749_p10 }
  0x86   :  { %p752_p13 = pnand %p751_p12, %p745_p7 }
  0x88   :  { %755 = shalt.err (!%p752_p13)  }
  0x89   :  { %s756_s10 = scalar_lea.vmem %s973_s17, 16  ;;  %p761_p1 = scmp.lt.s32.totalorder %s973_s17, %s897_s21 }
  0x8a   :  { %p757_p0 = scmp.ne.s32.totalorder %s973_s17, %s756_s10  ;;  %p762_p2 = scmp.lt.s32.totalorder %s923_s12, %s756_s10 }
  0x8c   :  { %p763_p3 = por %p762_p2, %p761_p1 }
  0x8e   :  { %p764_p4 = pnand %p763_p3, %p757_p0 }
  0x90   :  { %767 = shalt.err (!%p764_p4)  }
  0x91   :  { %110 = dma.hbm_to_vmem [thread:$0]  %s97_s5, 16, %s973_s17, [#allocation3 + $0x5] }
  0x92   :  { %s569_s11 = sshll.u32 %s970_s18, 4  ;;  %s570_s0 = sld [smem:[#allocation5 + $0x7]] }
  0x93   :  { %s113_s15 = scalar_lea.hbm %s1036_s1, %s569_s11 }
  0x94   :  { %s768_s16 = scalar_lea.hbm %s113_s15, 16  ;;  %p771_p6 = scmp.lt.u32.totalorder %s113_s15, %s1036_s1 }
  0x95   :  { %p769_p5 = scmp.ne.s32.totalorder %s113_s15, %s768_s16  ;;  %p772_p7 = scmp.lt.u32.totalorder %s914_s8, %s768_s16 }
  0x96   :  { %p774_p9 = scmp.lt.u32.totalorder %s768_s16, %s113_s15 }
  0x97   :  { %p773_p8 = por %p772_p7, %p771_p6 }
  0x99   :  { %p775_p10 = por %p774_p9, %p773_p8 }
  0x9b   :  { %p776_p11 = pnand %p775_p10, %p769_p5 }
  0x9d   :  { %779 = shalt.err (!%p776_p11)  }
  0x9e   :  { %s780_s17 = scalar_lea.vmem %s988_s27, 16  ;;  %p785_p13 = scmp.lt.s32.totalorder %s988_s27, %s897_s21 }
  0x9f   :  { %p781_p12 = scmp.ne.s32.totalorder %s988_s27, %s780_s17  ;;  %p786_p0 = scmp.lt.s32.totalorder %s923_s12, %s780_s17 }
  0xa1   :  { %p787_p1 = por %p786_p0, %p785_p13 }
  0xa3   :  { %p788_p2 = pnand %p787_p1, %p781_p12 }
  0xa5   :  { %791 = shalt.err (!%p788_p2)  }
  0xa6   :  { %126 = dma.hbm_to_vmem [thread:$0]  %s113_s15, 16, %s988_s27, [#allocation3 + $0x6] }
  0xa7   :  { %s866_s18 = smov [#allocation2 + $0x7]   ;;  %s571_s23 = sshll.u32 %s570_s0, 4 }
  0xa8   :  { %s139_s22 = sshll.u32 %s866_s18, 4  ;;  %s129_s28 = scalar_lea.hbm %s1036_s1, %s571_s23  ;;  %s140_s22 = int_to_ptr.vmem [resolvable:$true] %s139_s22 }
  0xa9   :  { %s792_s29 = scalar_lea.hbm %s129_s28, 16  ;;  %p795_p4 = scmp.lt.u32.totalorder %s129_s28, %s1036_s1 }
  0xaa   :  { %p793_p3 = scmp.ne.s32.totalorder %s129_s28, %s792_s29  ;;  %p796_p5 = scmp.lt.u32.totalorder %s914_s8, %s792_s29 }
  0xab   :  { %p798_p7 = scmp.lt.u32.totalorder %s792_s29, %s129_s28 }
  0xac   :  { %p797_p6 = por %p796_p5, %p795_p4 }
  0xae   :  { %p799_p8 = por %p798_p7, %p797_p6 }
  0xb0   :  { %p800_p9 = pnand %p799_p8, %p793_p3 }
  0xb2   :  { %803 = shalt.err (!%p800_p9)  }
  0xb3   :  { %s804_s27 = scalar_lea.vmem %s140_s22, 16  ;;  %p809_p11 = scmp.lt.s32.totalorder %s140_s22, %s897_s21 }
  0xb4   :  { %p805_p10 = scmp.ne.s32.totalorder %s140_s22, %s804_s27  ;;  %p810_p12 = scmp.lt.s32.totalorder %s923_s12, %s804_s27 }
  0xb6   :  { %p811_p13 = por %p810_p12, %p809_p11 }
  0xb8   :  { %p812_p0 = pnand %p811_p13, %p805_p10 }
  0xba   :  { %815 = shalt.err (!%p812_p0)  }
  0xbb   :  { %142 = dma.hbm_to_vmem [thread:$0]  %s129_s28, 16, %s140_s22, [#allocation3 + $0x7] }
  0xbc   :  { %840 = dma.done.wait [#allocation3], 16 }
  0xbd   :  { %841 = vsyncadd [#allocation3], 4294967280 }
  0xbe   :  { %842 = dma.done.wait [#allocation3 + $0x1], 16 }
  0xbf   :  { %843 = vsyncadd [#allocation3 + $0x1], 4294967280 }
  0xc0   :  { %844 = dma.done.wait [#allocation3 + $0x2], 16 }
  0xc1   :  { %845 = vsyncadd [#allocation3 + $0x2], 4294967280 }
  0xc2   :  { %846 = dma.done.wait [#allocation3 + $0x3], 16 }
  0xc3   :  { %847 = vsyncadd [#allocation3 + $0x3], 4294967280 }
  0xc4   :  { %848 = dma.done.wait [#allocation3 + $0x4], 16 }
  0xc5   :  { %849 = vsyncadd [#allocation3 + $0x4], 4294967280 }
  0xc6   :  { %850 = dma.done.wait [#allocation3 + $0x5], 16 }
  0xc7   :  { %851 = vsyncadd [#allocation3 + $0x5], 4294967280 }
  0xc8   :  { %852 = dma.done.wait [#allocation3 + $0x6], 16 }
  0xc9   :  { %853 = vsyncadd [#allocation3 + $0x6], 4294967280 }
  0xca   :  { %854 = dma.done.wait [#allocation3 + $0x7], 16 }
  0xcb   :  { %855 = vsyncadd [#allocation3 + $0x7], 4294967280  ;;  %s867_s1 = smov [#allocation6]   ;;  %v327_v0 = vld [vmem:[#allocation2] sm:$0xff] }
  0xcc   :  { %s335_s21 = sshll.u32 %s867_s1, 4  ;;  %328 = vst [vmem:[#allocation6] sm:$0xff] %v327_v0  ;;  %s336_s21 = int_to_ptr.vmem [resolvable:$true] %s335_s21 }
  0xcd   :  { %s816_s8 = scalar_lea.vmem %s336_s21, 128  ;;  %p821_p2 = scmp.lt.s32.totalorder %s336_s21, %s336_s21 }
  0xce   :  { %p817_p1 = scmp.ne.s32.totalorder %s336_s21, %s816_s8  ;;  %p822_p3 = scmp.lt.s32.totalorder %s816_s8, %s816_s8 }
  0xd0   :  { %p823_p4 = por %p822_p3, %p821_p2 }
  0xd2   :  { %p824_p5 = pnand %p823_p4, %p817_p1 }
  0xd4   :  { %827 = shalt.err (!%p824_p5)
}
  0xd5   :  { %s828_s4 = scalar_lea.hbm %s1037_s2, 128 }
  0xd6   :  { %p829_p6 = scmp.ne.s32.totalorder %s1037_s2, %s828_s4  ;;  %p832_p7 = scmp.lt.u32.totalorder %s828_s4, %s1037_s2 }
  0xd8   :  { %p834_p8 = pnand %p832_p7, %p829_p6 }
  0xda   :  { %837 = shalt.err (!%p834_p8)
}
  0xdb   :  { %338 = dma.vmem_to_hbm [thread:$0]  %s336_s21, 128, %s1037_s2, [#allocation7]  }
  0xdc   :  { %856 = dma.done.wait [#allocation7], 128  }
  0xdd   :  { %857 = vsyncadd [#allocation7], 4294967168 }
  0xde   :  { %342 = vsyncpa [#allocation7], 1 }
  0xdf   :  { %343 = vsyncmov [#allocation3] }
  0xe2   :  { %s344_s0 = vpop.sfrf %343 }
  0xe3   :  { %p588_p9 = scmp.ne.s32.totalorder %s344_s0, 0 }
  0xe5   :  { %348 = shalt.err (%p588_p9)  }
  0xe6   :  { %350 = vsyncmov [#allocation3 + $0x1] }
  0xe9   :  { %s351_s13 = vpop.sfrf %350 }
  0xea   :  { %p589_p10 = scmp.ne.s32.totalorder %s351_s13, 0 }
  0xec   :  { %355 = shalt.err (%p589_p10)  }
  0xed   :  { %357 = vsyncmov [#allocation3 + $0x2] }
  0xf0   :  { %s358_s14 = vpop.sfrf %357 }
  0xf1   :  { %p590_p11 = scmp.ne.s32.totalorder %s358_s14, 0 }
  0xf3   :  { %362 = shalt.err (%p590_p11)  }
  0xf4   :  { %364 = vsyncmov [#allocation3 + $0x3] }
  0xf7   :  { %s365_s15 = vpop.sfrf %364 }
  0xf8   :  { %p591_p12 = scmp.ne.s32.totalorder %s365_s15, 0 }
  0xfa   :  { %369 = shalt.err (%p591_p12)  }
  0xfb   :  { %371 = vsyncmov [#allocation3 + $0x4] }
  0xfe   :  { %s372_s2 = vpop.sfrf %371 }
  0xff   :  { %p592_p13 = scmp.ne.s32.totalorder %s372_s2, 0 }
 0x101   :  { %376 = shalt.err (%p592_p13)  }
 0x102   :  { %378 = vsyncmov [#allocation3 + $0x5] }
 0x105   :  { %s379_s16 = vpop.sfrf %378 }
 0x106   :  { %p593_p0 = scmp.ne.s32.totalorder %s379_s16, 0 }
 0x108   :  { %383 = shalt.err (%p593_p0)  }
 0x109   :  { %385 = vsyncmov [#allocation3 + $0x6] }
 0x10c   :  { %s386_s19 = vpop.sfrf %385 }
 0x10d   :  { %p594_p1 = scmp.ne.s32.totalorder %s386_s19, 0 }
 0x10f   :  { %390 = shalt.err (%p594_p1)  }
 0x110   :  { %392 = vsyncmov [#allocation3 + $0x7] }
 0x113   :  { %s393_s20 = vpop.sfrf %392 }
 0x114   :  { %p595_p2 = scmp.ne.s32.totalorder %s393_s20, 0 }
 0x116   :  { %397 = shalt.err (%p595_p2)  }
 0x117   :  { %399 = vsyncmov [#allocation3 + $0x8] }
 0x11a   :  { %s400_s17 = vpop.sfrf %399 }
 0x11b   :  { %p596_p3 = scmp.ne.s32.totalorder %s400_s17, 0 }
 0x11d   :  { %404 = shalt.err (%p596_p3)  }
 0x11e   :  { %406 = vsyncmov [#allocation3 + $0x9] }
 0x121   :  { %s407_s18 = vpop.sfrf %406 }
 0x122   :  { %p597_p4 = scmp.ne.s32.totalorder %s407_s18, 0 }
 0x124   :  { %411 = shalt.err (%p597_p4)  }
 0x125   :  { %413 = vsyncmov [#allocation3 + $0xa] }
 0x128   :  { %s414_s22 = vpop.sfrf %413 }
 0x129   :  { %p598_p5 = scmp.ne.s32.totalorder %s414_s22, 0 }
 0x12b   :  { %418 = shalt.err (%p598_p5)  }
 0x12c   :  { %420 = vsyncmov [#allocation3 + $0xb] }
 0x12f   :  { %s421_s23 = vpop.sfrf %420 }
 0x130   :  { %p599_p6 = scmp.ne.s32.totalorder %s421_s23, 0 }
 0x132   :  { %425 = shalt.err (%p599_p6)  }
 0x133   :  { %427 = vsyncmov [#allocation3 + $0xc] }
 0x136   :  { %s428_s25 = vpop.sfrf %427 }
 0x137   :  { %p600_p7 = scmp.ne.s32.totalorder %s428_s25, 0 }
 0x139   :  { %432 = shalt.err (%p600_p7)  }
 0x13a   :  { %434 = vsyncmov [#allocation3 + $0xd] }
 0x13d   :  { %s435_s26 = vpop.sfrf %434 }
 0x13e   :  { %p601_p8 = scmp.ne.s32.totalorder %s435_s26, 0 }
 0x140   :  { %439 = shalt.err (%p601_p8)  }
 0x141   :  { %441 = vsyncmov [#allocation3 + $0xe] }
 0x144   :  { %s442_s28 = vpop.sfrf %441 }
 0x145   :  { %p602_p9 = scmp.ne.s32.totalorder %s442_s28, 0 }
 0x147   :  { %446 = shalt.err (%p602_p9)  }
 0x148   :  { %448 = vsyncmov [#allocation3 + $0xf] }
 0x14b   :  { %s449_s29 = vpop.sfrf %448 }
 0x14c   :  { %p603_p10 = scmp.ne.s32.totalorder %s449_s29, 0 }
 0x14e   :  { %453 = shalt.err (%p603_p10)  }

</bundles_post_ra>
